<compile_context>
chip_gen: v6e
topology: v6e:2x2x1
jax: 0.10.0
libtpu: 0.0.40
codegen_flags: <defaults>
</compile_context>

<pallas_src>
import jax
import jax.numpy as jnp
from jax.experimental import pallas as pl
from jax.experimental.pallas import tpu as pltpu


# ----------------------------- Pallas kernel ---------------------------------

def _wec_matmul_kernel(m_ref, x_ref, o_ref):
    """out tile (TN, TL) += M tile (TN, TK) @ X tile (TK, TL), f32 accumulation.

    Grid = (N_pad//TN, L_pad//TL, N_pad//TK); the last axis is the reduction
    (contracted node) axis, marked "arbitrary", over which the output block is
    resident and accumulated in place.
    """
    @pl.when(pl.program_id(2) == 0)
    def _():
        o_ref[...] = jnp.zeros_like(o_ref)

    o_ref[...] += jnp.dot(m_ref[...], x_ref[...],
                          preferred_element_type=jnp.float32)


# ------------------------------- wrapper --------------------------------------

def _round_up(v, m):
    return ((v + m - 1) // m) * m


def _pick_tile(dim_pad, candidates):
    # dim_pad is always a multiple of 128; take the largest candidate that divides it.
    for c in candidates:
        if dim_pad % c == 0:
            return c
    return 128


def weighted_edge_conv(x, g, ew, aggregating=True):
    """Pallas implementation of WeightedEdgeConv.forward.

    x  : [B, N, C] or [N, C] float
    g  : [2, E] int
    ew : [E] float
    """
    squeeze = (x.ndim == 2)
    if squeeze:
        x = x[None]
    B, N, C = x.shape

    i_idx = g[0].astype(jnp.int32)
    j_idx = g[1].astype(jnp.int32)
    gather_idx = i_idx if aggregating else j_idx     # node each edge reads from
    scatter_idx = j_idx if aggregating else i_idx    # node each edge writes to

    L = B * C
    N_pad = _round_up(N, 128)
    L_pad = _round_up(L, 128)

    # Weighted adjacency, built once in plain JAX (setup glue, not the hot path).
    # Duplicate edges accumulate correctly via scatter-add; padded rows/cols stay 0.
    M = jnp.zeros((N_pad, N_pad), jnp.float32).at[scatter_idx, gather_idx].add(
        ew.astype(jnp.float32))

    # Fold batch into lanes: (B, N, C) -> (N, B*C); zero-pad to tile multiples.
    x2 = jnp.transpose(x.astype(jnp.float32), (1, 0, 2)).reshape(N, L)
    x2 = jnp.pad(x2, ((0, N_pad - N), (0, L_pad - L)))

    TN = _pick_tile(N_pad, (256, 128))         # output node-row tile
    TK = _pick_tile(N_pad, (1024, 512, 256, 128))   # contracted node tile (reduction)
    TL = _pick_tile(L_pad, (512, 256, 128))    # lane (batch*channel) tile
    grid = (N_pad // TN, L_pad // TL, N_pad // TK)

    flops = 2 * N_pad * N_pad * L_pad
    bytes_accessed = 4 * (N_pad * N_pad + 2 * N_pad * L_pad)

    out2 = pl.pallas_call(
        _wec_matmul_kernel,
        out_shape=jax.ShapeDtypeStruct((N_pad, L_pad), jnp.float32),
        grid_spec=pltpu.PrefetchScalarGridSpec(
            num_scalar_prefetch=0,
            grid=grid,
            in_specs=[
                pl.BlockSpec((TN, TK), lambda i, j, k: (i, k)),   # M tile
                pl.BlockSpec((TK, TL), lambda i, j, k: (k, j)),   # X tile
            ],
            out_specs=pl.BlockSpec((TN, TL), lambda i, j, k: (i, j)),
        ),
        compiler_params=pltpu.CompilerParams(
            dimension_semantics=("parallel", "parallel", "arbitrary"),
            vmem_limit_bytes=32 * 1024 * 1024,
        ),
        cost_estimate=pl.CostEstimate(
            flops=flops, transcendentals=0, bytes_accessed=bytes_accessed),
    )(M, x2)

    out = out2[:N, :L].reshape(N, B, C).transpose(1, 0, 2)
    return out[0] if squeeze else out


# --- plain-JAX helpers (glue / reference, not the hot path) -------------------

def cal_ew(w, g):
    """JAX port of WeightedEdgeConv.cal_ew (setup helper, plain JAX)."""
    num_nodes = w.shape[0]
    i, j = g[0], g[1]
    deg = jax.ops.segment_sum(jnp.ones_like(i, dtype=jnp.float32), i,
                              num_segments=num_nodes)
    normed_w = w.squeeze(-1) / deg
    w_to_send = normed_w[i]
    aggr_w = jax.ops.segment_sum(w_to_send, j, num_segments=num_nodes) + 1e-12
    ec = w_to_send / aggr_w[j]
    return ec, aggr_w


def ref_forward(x, g, ew, aggregating=True):
    """Pure-JAX reference of the PyTorch forward."""
    i, j = g[0], g[1]
    N = x.shape[-2]
    if x.ndim == 3:
        wi = x[:, i] if aggregating else x[:, j]
        wi = wi * ew[None, :, None]
        tgt = j if aggregating else i
        return jax.vmap(lambda w: jax.ops.segment_sum(w, tgt, num_segments=N))(wi)
    else:
        wi = x[i] if aggregating else x[j]
        wi = wi * ew[:, None]
        tgt = j if aggregating else i
        return jax.ops.segment_sum(wi, tgt, num_segments=N)


if __name__ == "__main__":
    key = jax.random.PRNGKey(0)
    k1, k2, k3, k4 = jax.random.split(key, 4)

    B, N, C = 2, 16, 8
    E = 48

    # Graph: first N edges guarantee every node has out-degree >= 1 (avoids deg=0),
    # remaining edges are random.
    src_extra = jax.random.randint(k1, (E - N,), 0, N, dtype=jnp.int32)
    src = jnp.concatenate([jnp.arange(N, dtype=jnp.int32), src_extra])
    dst = jax.random.randint(k2, (E,), 0, N, dtype=jnp.int32)
    g = jnp.stack([src, dst])                                  # [2, E]

    # Node weights -> edge weights via cal_ew (deterministic).
    w = jax.random.uniform(k3, (N, 1), dtype=jnp.float32) + 0.5
    ew, _aggr_w = cal_ew(w, g)                                 # [E]

    # Node features.
    x = jax.random.normal(k4, (B, N, C), dtype=jnp.float32)    # [B, N, C]

    # Run Pallas kernel (both down-pass aggregate and up-pass scatter modes, and 2D).
    out_down = jax.block_until_ready(weighted_edge_conv(x, g, ew, aggregating=True))
    out_up = jax.block_until_ready(weighted_edge_conv(x, g, ew, aggregating=False))
    out_2d = jax.block_until_ready(weighted_edge_conv(x[0], g, ew, aggregating=True))

    # Verify against pure-JAX reference.
    ref_down = ref_forward(x, g, ew, aggregating=True)
    ref_up = ref_forward(x, g, ew, aggregating=False)
    ref_2d = ref_forward(x[0], g, ew, aggregating=True)

    assert out_down.shape == (B, N, C) and out_down.dtype == jnp.float32
    assert out_2d.shape == (N, C)
    assert jnp.allclose(out_down, ref_down, atol=1e-5, rtol=1e-5)
    assert jnp.allclose(out_up, ref_up, atol=1e-5, rtol=1e-5)
    assert jnp.allclose(out_2d, ref_2d, atol=1e-5, rtol=1e-5)

    print("KERNEL_OK")
</pallas_src>

<mosaic_0001>
module attributes {stable_mosaic.version = 11 : i64} {
  func.func @_wec_matmul_kernel(%arg0: i32, %arg1: i32, %arg2: i32, %arg3: memref<128x128xf32, #tpu.memory_space<vmem>>, %arg4: memref<128x128xf32, #tpu.memory_space<vmem>>, %arg5: memref<128x128xf32, #tpu.memory_space<vmem>>) attributes {dimension_semantics = [#tpu.dimension_semantics<parallel>, #tpu.dimension_semantics<parallel>, #tpu.dimension_semantics<arbitrary>], iteration_bounds = array<i64: 1, 1, 1>, scalar_prefetch = 0 : i64, scratch_operands = 0 : i64, tpu.core_type = #tpu.core_type<tc>, window_params = [{transform_indices = @transform_0, window_bounds = array<i64: 128, 128>}, {transform_indices = @transform_1, window_bounds = array<i64: 128, 128>}, {transform_indices = @transform_2, window_bounds = array<i64: 128, 128>}]} {
    %c0_i32 = arith.constant 0 : i32
    %0 = arith.cmpi eq, %arg2, %c0_i32 : i32
    %1 = arith.extui %0 : i1 to i32
    %c0_i32_0 = arith.constant 0 : i32
    %2 = arith.cmpi ne, %1, %c0_i32_0 : i32
    scf.if %2 {
      %cst_8 = arith.constant 0.000000e+00 : f32
      %9 = vector.broadcast %cst_8 : f32 to vector<128x128xf32>
      %c0_9 = arith.constant 0 : index
      %c0_10 = arith.constant 0 : index
      %10 = vector.load %arg5[%c0_9, %c0_10] : memref<128x128xf32, #tpu.memory_space<vmem>>, vector<128x128xf32>
      tpu.vector_store %arg5[%c0_9, %c0_10], %9 {strides = array<i32>} : memref<128x128xf32, #tpu.memory_space<vmem>>, vector<128x128xf32>,
    } else {
    }
    %c0 = arith.constant 0 : index
    %c0_1 = arith.constant 0 : index
    %3 = vector.load %arg5[%c0, %c0_1] : memref<128x128xf32, #tpu.memory_space<vmem>>, vector<128x128xf32>
    %c0_2 = arith.constant 0 : index
    %c0_3 = arith.constant 0 : index
    %4 = vector.load %arg3[%c0_2, %c0_3] : memref<128x128xf32, #tpu.memory_space<vmem>>, vector<128x128xf32>
    %c0_4 = arith.constant 0 : index
    %c0_5 = arith.constant 0 : index
    %5 = vector.load %arg4[%c0_4, %c0_5] : memref<128x128xf32, #tpu.memory_space<vmem>>, vector<128x128xf32>
    %cst = arith.constant dense<0.000000e+00> : vector<128x128xf32>
    %6 = tpu.matmul %4, %5, %cst {dimension_numbers = #tpu.dot_dimension_numbers<[1], [0], [0], [1], [0, 0, 1, 1], [], []>} : vector<128x128xf32>, vector<128x128xf32>, vector<128x128xf32> -> vector<128x128xf32>
    %7 = arith.addf %3, %6 : vector<128x128xf32>
    %c0_6 = arith.constant 0 : index
    %c0_7 = arith.constant 0 : index
    %8 = vector.load %arg5[%c0_6, %c0_7] : memref<128x128xf32, #tpu.memory_space<vmem>>, vector<128x128xf32>
    tpu.vector_store %arg5[%c0_6, %c0_7], %7 {strides = array<i32>} : memref<128x128xf32, #tpu.memory_space<vmem>>, vector<128x128xf32>,
    return
  }
  func.func @transform_0(%arg0: i32, %arg1: i32, %arg2: i32) -> (i32, i32) {
    %c0_i32 = arith.constant 0 : i32
    return %arg0, %arg2 : i32, i32
  }
  func.func @transform_1(%arg0: i32, %arg1: i32, %arg2: i32) -> (i32, i32) {
    %c0_i32 = arith.constant 0 : i32
    return %arg2, %arg1 : i32, i32
  }
  func.func @transform_2(%arg0: i32, %arg1: i32, %arg2: i32) -> (i32, i32) {
    %c0_i32 = arith.constant 0 : i32
    return %arg0, %arg1 : i32, i32
  }
}

</mosaic_0001>

<bundles_post_ra>
// kernel: tpu_custom_call.1
= control target key start
LH: loop header
LB: loop body
LE: loop exit
PB: predicated region body
PF: predicated region fallthrough
CT: control target
= control target key end

     0   :  { %7 = vsyncpa [#allocation3], 0  ;;  %s533_s0 = inlined_call_operand.hbm [shape: f32[128,128], index: 0, kind: input, shape index: {}]   ;;  %s534_s1 = inlined_call_operand.hbm [shape: f32[128,128], index: 1, kind: input, shape index: {}]   ;;  %s535_s2 = inlined_call_operand.hbm [shape: f32[128,128], index: 2, kind: output, shape index: {}]  }
   0x1   :  { %8 = vsyncpa [#allocation6], 0 }
   0x2   :  { %9 = vsyncpa [#allocation4], 0  ;;  %s495_s9 = smov [#allocation2]  }
   0x3   :  { %s15_s10 = sshll.u32 %s495_s9, 4  ;;  %s16_s10 = int_to_ptr.vmem [resolvable:$true] %s15_s10 }
   0x4   :  { %s437_s11 = scalar_lea.vmem %s16_s10, 2048  ;;  %p442_p1 = scmp.lt.s32.totalorder %s16_s10, %s16_s10 }
   0x5   :  { %p438_p0 = scmp.ne.s32.totalorder %s16_s10, %s437_s11  ;;  %p443_p2 = scmp.lt.s32.totalorder %s437_s11, %s437_s11 }
   0x7   :  { %p444_p3 = por %p443_p2, %p442_p1 }
   0x9   :  { %p445_p4 = pnand %p444_p3, %p438_p0 }
   0xb   :  { %448 = shalt.err (!%p445_p4)
}
   0xc   :  { %s496_s12 = smov 128   ;;  %s497_s13 = smov 8  }
   0xd   :  { %21 = dma.hbm_to_vmem [thread:$0]  %s533_s0, 2048, %s16_s10, [#allocation3], %s496_s12, %s496_s12, %s497_s13  }
   0xe   :  { %s498_s16 = smov [#allocation5]  }
   0xf   :  { %s27_s17 = sshll.u32 %s498_s16, 4  ;;  %s28_s17 = int_to_ptr.vmem [resolvable:$true] %s27_s17 }
  0x10   :  { %s457_s18 = scalar_lea.vmem %s28_s17, 2048  ;;  %p462_p6 = scmp.lt.s32.totalorder %s28_s17, %s28_s17 }
  0x11   :  { %p458_p5 = scmp.ne.s32.totalorder %s28_s17, %s457_s18  ;;  %p463_p7 = scmp.lt.s32.totalorder %s457_s18, %s457_s18 }
  0x13   :  { %p464_p8 = por %p463_p7, %p462_p6 }
  0x15   :  { %p465_p9 = pnand %p464_p8, %p458_p5 }
  0x17   :  { %468 = shalt.err (!%p465_p9)
}
  0x18   :  { %33 = dma.hbm_to_vmem [thread:$0]  %s534_s1, 2048, %s28_s17, [#allocation6], %s496_s12, %s496_s12, %s497_s13  }
  0x19   :  { %489 = dma.done.wait [#allocation3], 2048  }
  0x1a   :  { %490 = vsyncadd [#allocation3], 4294965248 }
  0x1b   :  { %491 = dma.done.wait [#allocation6], 2048  }
  0x1c   :  { %492 = vsyncadd [#allocation6], 4294965248  ;;  %v107_v0 = vld [vmem:[#allocation5 + $0x78] sm:$0xff]  ;;  %v106_v1 = vld [vmem:[#allocation5 + $0x70] sm:$0xff]  ;;  %s499_s0 = smov [#allocation7]  }
  0x1d   :  { %335 = vmatprep.subr.mxu0 %v107_v0  ;;  %391 = vmatprep.subr.mxu1 %v107_v0  ;;  %v105_v2 = vld [vmem:[#allocation5 + $0x68] sm:$0xff]  ;;  %v104_v3 = vld [vmem:[#allocation5 + $0x60] sm:$0xff]  ;;  %v103_v4 = vld [vmem:[#allocation5 + $0x58] sm:$0xff]  ;;  %s290_s1 = sshll.u32 %s499_s0, 4  ;;  %s291_s1 = int_to_ptr.vmem [resolvable:$true] %s290_s1 }
  0x1e   :  { %336 = vmatpush3.msra.mxu0 %v107_v0  ;;  %407 = vmatpush3.msra.mxu1 %v107_v0  ;;  %v102_v5 = vld [vmem:[#allocation5 + $0x50] sm:$0xff]  ;;  %v101_v6 = vld [vmem:[#allocation5 + $0x48] sm:$0xff]  ;;  %v100_v7 = vld [vmem:[#allocation5 + $0x40] sm:$0xff]  ;;  %s469_s21 = scalar_lea.vmem %s291_s1, 2048  ;;  %p474_p11 = scmp.lt.s32.totalorder %s291_s1, %s291_s1 }
  0x1f   :  { %337 = vmatprep.subr.mxu0 %v106_v1  ;;  %392 = vmatprep.subr.mxu1 %v106_v1  ;;  %v99_v8 = vld [vmem:[#allocation5 + $0x38] sm:$0xff]  ;;  %v98_v9 = vld [vmem:[#allocation5 + $0x30] sm:$0xff]  ;;  %v97_v10 = vld [vmem:[#allocation5 + $0x28] sm:$0xff]  ;;  %p470_p10 = scmp.ne.s32.totalorder %s291_s1, %s469_s21  ;;  %p475_p12 = scmp.lt.s32.totalorder %s469_s21, %s469_s21 }
  0x20   :  { %338 = vmatpush3.msra.mxu0 %v106_v1  ;;  %408 = vmatpush3.msra.mxu1 %v106_v1  ;;  %v96_v11 = vld [vmem:[#allocation5 + $0x20] sm:$0xff]  ;;  %v95_v12 = vld [vmem:[#allocation5 + $0x18] sm:$0xff]  ;;  %v94_v13 = vld [vmem:[#allocation5 + $0x10] sm:$0xff] }
  0x21   :  { %339 = vmatprep.subr.mxu0 %v105_v2  ;;  %393 = vmatprep.subr.mxu1 %v105_v2  ;;  %v93_v14 = vld [vmem:[#allocation5 + $0x8] sm:$0xff]  ;;  %v92_v15 = vld [vmem:[#allocation5] sm:$0xff]  ;;  %v78_v20 = vld [vmem:[#allocation2 + $0x10] sm:$0xff]  ;;  %p476_p13 = por %p475_p12, %p474_p11 }
  0x22   :  { %340 = vmatpush3.msra.mxu0 %v105_v2  ;;  %409 = vmatpush3.msra.mxu1 %v105_v2  ;;  %v76_v16 = vld [vmem:[#allocation2] sm:$0xff]  ;;  %v77_v18 = vld [vmem:[#allocation2 + $0x8] sm:$0xff]  ;;  %v86_v21 = vld [vmem:[#allocation2 + $0x50] sm:$0xff] }
  0x23   :  { %341 = vmatprep.subr.mxu0 %v104_v3  ;;  %394 = vmatprep.subr.mxu1 %v104_v3  ;;  %v84_v17 = vld [vmem:[#allocation2 + $0x40] sm:$0xff]  ;;  %v85_v19 = vld [vmem:[#allocation2 + $0x48] sm:$0xff]  ;;  %v79_v22 = vld [vmem:[#allocation2 + $0x18] sm:$0xff]  ;;  %p477_p0 = pnand %p476_p13, %p470_p10 }
  0x24   :  { %342 = vmatpush3.msra.mxu0 %v104_v3  ;;  %410 = vmatpush3.msra.mxu1 %v104_v3  ;;  %v87_v23 = vld [vmem:[#allocation2 + $0x58] sm:$0xff]  ;;  %v80_v24 = vld [vmem:[#allocation2 + $0x20] sm:$0xff]  ;;  %v81_v26 = vld [vmem:[#allocation2 + $0x28] sm:$0xff] }
  0x25   :  { %343 = vmatprep.subr.mxu0 %v103_v4  ;;  %395 = vmatprep.subr.mxu1 %v103_v4  ;;  %v88_v25 = vld [vmem:[#allocation2 + $0x60] sm:$0xff]  ;;  %v89_v27 = vld [vmem:[#allocation2 + $0x68] sm:$0xff]  ;;  %v82_v28 = vld [vmem:[#allocation2 + $0x30] sm:$0xff] }
  0x26   :  { %344 = vmatpush3.msra.mxu0 %v103_v4  ;;  %411 = vmatpush3.msra.mxu1 %v103_v4  ;;  %v90_v29 = vld [vmem:[#allocation2 + $0x70] sm:$0xff]  ;;  %v83_v30 = vld [vmem:[#allocation2 + $0x38] sm:$0xff] }
  0x27   :  { %345 = vmatprep.subr.mxu0 %v102_v5  ;;  %396 = vmatprep.subr.mxu1 %v102_v5  ;;  %v91_v31 = vld [vmem:[#allocation2 + $0x78] sm:$0xff] }
  0x28   :  { %346 = vmatpush3.msra.mxu0 %v102_v5  ;;  %412 = vmatpush3.msra.mxu1 %v102_v5 }
  0x29   :  { %347 = vmatprep.subr.mxu0 %v101_v6  ;;  %397 = vmatprep.subr.mxu1 %v101_v6 }
  0x2a   :  { %348 = vmatpush3.msra.mxu0 %v101_v6  ;;  %413 = vmatpush3.msra.mxu1 %v101_v6 }
  0x2b   :  { %349 = vmatprep.subr.mxu0 %v100_v7  ;;  %398 = vmatprep.subr.mxu1 %v100_v7 }
  0x2c   :  { %350 = vmatpush3.msra.mxu0 %v100_v7  ;;  %414 = vmatpush3.msra.mxu1 %v100_v7 }
  0x2d   :  { %351 = vmatprep.subr.mxu0 %v99_v8  ;;  %399 = vmatprep.subr.mxu1 %v99_v8 }
  0x2e   :  { %352 = vmatpush3.msra.mxu0 %v99_v8  ;;  %415 = vmatpush3.msra.mxu1 %v99_v8 }
  0x2f   :  { %353 = vmatprep.subr.mxu0 %v98_v9  ;;  %400 = vmatprep.subr.mxu1 %v98_v9 }
  0x30   :  { %354 = vmatpush3.msra.mxu0 %v98_v9  ;;  %416 = vmatpush3.msra.mxu1 %v98_v9 }
  0x31   :  { %355 = vmatprep.subr.mxu0 %v97_v10  ;;  %401 = vmatprep.subr.mxu1 %v97_v10 }
  0x32   :  { %356 = vmatpush3.msra.mxu0 %v97_v10  ;;  %417 = vmatpush3.msra.mxu1 %v97_v10 }
  0x33   :  { %357 = vmatprep.subr.mxu0 %v96_v11  ;;  %402 = vmatprep.subr.mxu1 %v96_v11 }
  0x34   :  { %358 = vmatpush3.msra.mxu0 %v96_v11  ;;  %418 = vmatpush3.msra.mxu1 %v96_v11 }
  0x35   :  { %359 = vmatprep.subr.mxu0 %v95_v12  ;;  %403 = vmatprep.subr.mxu1 %v95_v12 }
  0x36   :  { %360 = vmatpush3.msra.mxu0 %v95_v12  ;;  %419 = vmatpush3.msra.mxu1 %v95_v12 }
  0x37   :  { %361 = vmatprep.subr.mxu0 %v94_v13  ;;  %404 = vmatprep.subr.mxu1 %v94_v13 }
  0x38   :  { %362 = vmatpush3.msra.mxu0 %v94_v13  ;;  %420 = vmatpush3.msra.mxu1 %v94_v13 }
  0x39   :  { %363 = vmatprep.subr.mxu0 %v93_v14  ;;  %405 = vmatprep.subr.mxu1 %v93_v14 }
  0x3a   :  { %364 = vmatpush3.msra.mxu0 %v93_v14  ;;  %421 = vmatpush3.msra.mxu1 %v93_v14 }
  0x3b   :  { %365 = vmatprep.subr.mxu0 %v92_v15  ;;  %406 = vmatprep.subr.mxu1 %v92_v15 }
  0x3c   :  { %366 = vmatpush3.msra.mxu0 %v92_v15  ;;  %422 = vmatpush3.msra.mxu1 %v92_v15 }
  0x3d   :  { %367 = vmatprep.mubr.f32.mxu0 %v76_v16  ;;  %379 = vmatprep.mubr.f32.mxu1 %v84_v17 }
  0x3e   :  { %368 = vmatmul.mubr.f32.vlgmr.msra.gmra.mxu0 %v77_v18  ;;  %380 = vmatmul.mubr.f32.vlgmr.msra.gmra.mxu1 %v85_v19 }
  0x3f   :  { %370 = vmatprep.mubr.f32.mxu0 %v78_v20  ;;  %382 = vmatprep.mubr.f32.mxu1 %v86_v21 }
  0x42   :  { %371 = vmatmul.mubr.f32.gmra.mxu0 %v79_v22  ;;  %383 = vmatmul.mubr.f32.gmra.mxu1 %v87_v23 }
  0x43   :  { %373 = vmatprep.mubr.f32.mxu0 %v80_v24  ;;  %385 = vmatprep.mubr.f32.mxu1 %v88_v25 }
  0x46   :  { %374 = vmatmul.mubr.f32.gmra.mxu0 %v81_v26  ;;  %386 = vmatmul.mubr.f32.gmra.mxu1 %v89_v27 }
  0x47   :  { %376 = vmatprep.mubr.f32.mxu0 %v82_v28  ;;  %388 = vmatprep.mubr.f32.mxu1 %v90_v29 }
  0x4a   :  { %377 = vmatmul.mubr.f32.gmra.mxu0 %v83_v30  ;;  %389 = vmatmul.mubr.f32.gmra.mxu1 %v91_v31 }
  0xfe   :  { %v369_v32 = vpop.f32.mrf.mxu0  ;;  %v381_v33 = vpop.f32.mrf.mxu1 }
  0xff   :  { %270 = vst [vmem:[#allocation7 + $0x8] sm:$0xff] %v369_v32  ;;  %278 = vst [vmem:[#allocation7 + $0x48] sm:$0xff] %v381_v33 }
 0x100   :  { %v174_v34 = vpop.f32.mrf.mxu0  ;;  %v214_v35 = vpop.f32.mrf.mxu1 }
 0x101   :  { %269 = vst [vmem:[#allocation7] sm:$0xff] %v174_v34  ;;  %277 = vst [vmem:[#allocation7 + $0x40] sm:$0xff] %v214_v35 }
 0x102   :  { %v372_v36 = vpop.f32.mrf.mxu0  ;;  %v384_v37 = vpop.f32.mrf.mxu1 }
 0x103   :  { %272 = vst [vmem:[#allocation7 + $0x18] sm:$0xff] %v372_v36  ;;  %280 = vst [vmem:[#allocation7 + $0x58] sm:$0xff] %v384_v37 }
 0x104   :  { %v184_v38 = vpop.f32.mrf.mxu0  ;;  %v224_v39 = vpop.f32.mrf.mxu1 }
 0x105   :  { %271 = vst [vmem:[#allocation7 + $0x10] sm:$0xff] %v184_v38  ;;  %279 = vst [vmem:[#allocation7 + $0x50] sm:$0xff] %v224_v39 }
 0x106   :  { %v375_v40 = vpop.f32.mrf.mxu0  ;;  %v387_v41 = vpop.f32.mrf.mxu1 }
 0x107   :  { %274 = vst [vmem:[#allocation7 + $0x28] sm:$0xff] %v375_v40  ;;  %282 = vst [vmem:[#allocation7 + $0x68] sm:$0xff] %v387_v41 }
 0x108   :  { %v194_v42 = vpop.f32.mrf.mxu0  ;;  %v234_v43 = vpop.f32.mrf.mxu1 }
 0x109   :  { %273 = vst [vmem:[#allocation7 + $0x20] sm:$0xff] %v194_v42  ;;  %281 = vst [vmem:[#allocation7 + $0x60] sm:$0xff] %v234_v43 }
 0x10a   :  { %v378_v44 = vpop.f32.mrf.mxu0  ;;  %v390_v45 = vpop.f32.mrf.mxu1 }
 0x10b   :  { %276 = vst [vmem:[#allocation7 + $0x38] sm:$0xff] %v378_v44  ;;  %284 = vst [vmem:[#allocation7 + $0x78] sm:$0xff] %v390_v45 }
 0x10c   :  { %v204_v46 = vpop.f32.mrf.mxu0  ;;  %v244_v47 = vpop.f32.mrf.mxu1 }
 0x10d   :  { %275 = vst [vmem:[#allocation7 + $0x30] sm:$0xff] %v204_v46  ;;  %283 = vst [vmem:[#allocation7 + $0x70] sm:$0xff] %v244_v47 }
 0x10e   :  { %480 = shalt.err (!%p477_p0)
}
 0x10f   :  { %296 = dma.vmem_to_hbm [thread:$0]  %s291_s1, 2048, %s535_s2, [#allocation4], %s496_s12, %s496_s12, %s497_s13  }
 0x110   :  { %493 = dma.done.wait [#allocation4], 2048  }
 0x111   :  { %494 = vsyncadd [#allocation4], 4294965248 }
 0x112   :  { %300 = vsyncpa [#allocation3], 1 }
 0x113   :  { %301 = vsyncpa [#allocation6], 1 }
 0x114   :  { %302 = vsyncpa [#allocation4], 1 }

</bundles_post_ra>
